<compile_context>
chip_gen: v5e
topology: v5e:2x2
jax: 0.10.0
libtpu: 0.0.40
codegen_flags: <defaults>
</compile_context>

<pallas_src>
import functools

import jax
import jax.numpy as jnp
from jax.experimental import pallas as pl
from jax.experimental.pallas import tpu as pltpu

F_PAD = 128         # all feature dims (state=11, hidden=16, action=3) zero-padded to 128 lanes
MAX_TILE_B = 4096   # batch-tile rows; bf16 in/out double-buffered ~4 MiB, safe on v7x 32 MiB scoped VMEM
SINGLE_TILE_B = 512 # below this, don't bother splitting the batch into multiple tiles


def _round_up(x, m):
    return -(-x // m) * m


def _actor_kernel(x_ref, w_ref, b_ref, out_ref):
    """One batch tile of the 3-layer noisy-MLP actor (pre-tanh output).

    x_ref  : [TB, 128]      bf16  zero-padded states
    w_ref  : [3, 128, 128]  bf16  pre-combined noisy weights, [in, out] layout, zero-padded
    b_ref  : [3, 128]       f32   pre-combined noisy biases, zero-padded
    out_ref: [TB, 128]      bf16  pre-tanh layer-3 output; cols >= action_dim are exactly 0
    """
    # layer 1: matmul (bf16 in, f32 acc) + bias, ReLU in bf16
    h = jnp.dot(x_ref[...], w_ref[0], preferred_element_type=jnp.float32) + b_ref[0]
    h = jnp.maximum(h.astype(jnp.bfloat16), 0)

    # layer 2
    h = jnp.dot(h, w_ref[1], preferred_element_type=jnp.float32) + b_ref[1]
    h = jnp.maximum(h.astype(jnp.bfloat16), 0)

    # layer 3 (pre-tanh); tanh * max_action applied in the jitted wrapper on real columns only
    h = jnp.dot(h, w_ref[2], preferred_element_type=jnp.float32) + b_ref[2]
    out_ref[...] = h.astype(out_ref.dtype)


@functools.partial(jax.jit, static_argnames=("max_action", "action_dim"))
def actor_forward(x, packed_w, packed_b, *, max_action, action_dim):
    """x: [B, state_dim] f32.  packed_w: [3,128,128] bf16.  packed_b: [3,128] f32."""
    B, state_dim = x.shape
    F = F_PAD

    # Batch padding/tiling: multiples of 16 (bf16 (16,128) vreg tile). For small batches use
    # a single tile; for large batches guarantee >= 2 tiles (v7x dual-TC) capped at MAX_TILE_B.
    B16 = _round_up(B, 16)
    if B16 <= SINGLE_TILE_B:
        TB = B16
    else:
        TB = min(MAX_TILE_B, _round_up(B16 // 2, 16))
    B_pad = _round_up(B16, TB)

    # Zero-pad + bf16 cast of the input (fuses under this jit).
    x_pad = jnp.zeros((B_pad, F), jnp.bfloat16).at[:B, :state_dim].set(
        x.astype(jnp.bfloat16))

    cost = pl.CostEstimate(
        flops=2 * B_pad * F * F * 3,
        transcendentals=0,                              # tanh is outside the kernel now
        bytes_accessed=(B_pad * F * 2                   # x  (bf16)
                        + packed_w.size * 2             # W  (bf16)
                        + packed_b.size * 4             # b  (f32)
                        + B_pad * F * 2),               # out (bf16)
    )

    out_pad = pl.pallas_call(
        _actor_kernel,
        out_shape=jax.ShapeDtypeStruct((B_pad, F), jnp.bfloat16),
        grid=(B_pad // TB,),
        in_specs=[
            pl.BlockSpec((TB, F), lambda i: (i, 0)),       # activation stream, tiled on batch
            pl.BlockSpec((3, F, F), lambda i: (0, 0, 0)),  # weights: constant block -> VMEM-resident
            pl.BlockSpec((3, F), lambda i: (0, 0)),        # biases: constant block -> VMEM-resident
        ],
        out_specs=pl.BlockSpec((TB, F), lambda i: (i, 0)),  # lane-dense (128-wide) bf16 output
        compiler_params=pltpu.CompilerParams(
            dimension_semantics=("parallel",),              # shard batch tiles across v7x's 2 TCs
        ),
        cost_estimate=cost,
    )(x_pad, packed_w, packed_b)

    # Slice to the real rows/columns, then tanh * max_action on just [B, action_dim] (fused here).
    pre = out_pad[:B, :action_dim].astype(jnp.float32)
    return jnp.tanh(pre) * max_action


def init_noisy_layer(key, in_features, out_features, sigma=0.017):
    """Deterministic init matching IndependentNoisyLayer.__init__ + sample_noise.
    Layout matches torch: weights [out, in], biases [out]."""
    k_mw, k_mb, k_ew, k_eb = jax.random.split(key, 4)
    bound = (1.0 / in_features) ** 0.5
    mu_w = jax.random.uniform(k_mw, (out_features, in_features), jnp.float32, -bound, bound)
    mu_b = jax.random.uniform(k_mb, (out_features,), jnp.float32, -bound, bound)
    sigma_w = jnp.full((out_features, in_features), sigma, jnp.float32)
    sigma_b = jnp.full((out_features,), sigma, jnp.float32)
    eps_w = jax.random.normal(k_ew, (out_features, in_features), jnp.float32)
    eps_b = jax.random.normal(k_eb, (out_features,), jnp.float32)
    return (mu_w, sigma_w, eps_w, mu_b, sigma_b, eps_b)


def combine_and_pack(layers):
    """Noisy-weight combine (done once per sample_noise) + pad/pack for the kernel.

    Returns:
      packed_w: [3, F_PAD, F_PAD] bf16, each slice is (mu + sigma*eps).T zero-padded ([in, out])
      packed_b: [3, F_PAD] f32,  each row is  mu_b + sigma_b*eps_b zero-padded
    """
    ws, bs = [], []
    for (mw, sw, ew, mb, sb, eb) in layers:
        w = (mw + sw * ew).T                      # [in, out]
        b = mb + sb * eb                          # [out]
        in_f, out_f = w.shape
        ws.append(jnp.zeros((F_PAD, F_PAD), jnp.float32).at[:in_f, :out_f].set(w))
        bs.append(jnp.zeros((F_PAD,), jnp.float32).at[:out_f].set(b))
    return jnp.stack(ws).astype(jnp.bfloat16), jnp.stack(bs)


def actor_reference(x, layers, max_action):
    """Pure-JAX f32 reference with the original (unpadded) parameters."""
    h = x
    for i, (mw, sw, ew, mb, sb, eb) in enumerate(layers):
        w = mw + sw * ew
        b = mb + sb * eb
        h = h @ w.T + b
        if i < len(layers) - 1:
            h = jax.nn.relu(h)
    return jnp.tanh(h) * max_action


if __name__ == "__main__":
    # Hopper-v5: state_dim=11, action_dim=3, max_action=1.0, hidden=16 (from the module)
    state_dim, action_dim, hidden, max_action = 11, 3, 16, 1.0
    batch = 4

    root = jax.random.PRNGKey(0)
    k_x, k1, k2, k3 = jax.random.split(root, 4)
    layers = [
        init_noisy_layer(k1, state_dim, hidden),
        init_noisy_layer(k2, hidden, hidden),
        init_noisy_layer(k3, hidden, action_dim),
    ]

    packed_w, packed_b = combine_and_pack(layers)
    x = jax.random.normal(k_x, (batch, state_dim), jnp.float32)

    out = actor_forward(x, packed_w, packed_b,
                        max_action=max_action, action_dim=action_dim)
    out = jax.block_until_ready(out)

    ref = actor_reference(x, layers, max_action)
    assert out.shape == (batch, action_dim), out.shape
    # bf16 MXU inputs / bf16 pre-tanh output (f32 accumulation) give ~1e-2-level deviation
    # vs the pure-f32 reference.
    assert jnp.allclose(out, ref, atol=5e-2, rtol=5e-2), (out, ref)

    print("KERNEL_OK")
</pallas_src>

<mosaic_0001>
module attributes {stable_mosaic.version = 11 : i64} {
  func.func @_actor_kernel(%arg0: i32, %arg1: memref<16x128xbf16, #tpu.memory_space<vmem>>, %arg2: memref<3x128x128xbf16, #tpu.memory_space<vmem>>, %arg3: memref<3x128xf32, #tpu.memory_space<vmem>>, %arg4: memref<16x128xbf16, #tpu.memory_space<vmem>>) attributes {dimension_semantics = [#tpu.dimension_semantics<parallel>], iteration_bounds = array<i64: 1>, scalar_prefetch = 0 : i64, scratch_operands = 0 : i64, tpu.core_type = #tpu.core_type<tc>, window_params = [{transform_indices = @transform_0, window_bounds = array<i64: 16, 128>}, {pipeline_mode = #tpu.pipeline_mode<synchronous>, transform_indices = @transform_1, window_bounds = array<i64: 3, 128, 128>}, {pipeline_mode = #tpu.pipeline_mode<synchronous>, transform_indices = @transform_2, window_bounds = array<i64: 3, 128>}, {transform_indices = @transform_3, window_bounds = array<i64: 16, 128>}]} {
    %c0 = arith.constant 0 : index
    %c0_0 = arith.constant 0 : index
    %0 = vector.load %arg1[%c0, %c0_0] : memref<16x128xbf16, #tpu.memory_space<vmem>>, vector<16x128xbf16>
    %c0_1 = arith.constant 0 : index
    %c0_2 = arith.constant 0 : index
    %c0_3 = arith.constant 0 : index
    %1 = vector.load %arg2[%c0_1, %c0_2, %c0_3] : memref<3x128x128xbf16, #tpu.memory_space<vmem>>, vector<1x128x128xbf16>
    %2 = vector.shape_cast %1 : vector<1x128x128xbf16> to vector<128x128xbf16>
    %cst = arith.constant dense<0.000000e+00> : vector<16x128xf32>
    %3 = tpu.matmul %0, %2, %cst {dimension_numbers = #tpu.dot_dimension_numbers<[1], [0], [0], [1], [0, 0, 1, 1], [], []>} : vector<16x128xbf16>, vector<128x128xbf16>, vector<16x128xf32> -> vector<16x128xf32>
    %c0_4 = arith.constant 0 : index
    %c0_5 = arith.constant 0 : index
    %4 = vector.load %arg3[%c0_4, %c0_5] : memref<3x128xf32, #tpu.memory_space<vmem>>, vector<1x128xf32>
    %5 = vector.shape_cast %4 : vector<1x128xf32> to vector<128xf32>
    %6 = vector.shape_cast %5 : vector<128xf32> to vector<1x128xf32>
    %7 = vector.broadcast %6 : vector<1x128xf32> to vector<16x128xf32>
    %8 = arith.addf %3, %7 : vector<16x128xf32>
    %9 = arith.truncf %8 : vector<16x128xf32> to vector<16x128xbf16>
    %cst_6 = arith.constant 0.000000e+00 : bf16
    %10 = vector.broadcast %cst_6 : bf16 to vector<16x128xbf16>
    %11 = arith.maximumf %9, %10 : vector<16x128xbf16>
    %c1 = arith.constant 1 : index
    %c0_7 = arith.constant 0 : index
    %c0_8 = arith.constant 0 : index
    %12 = vector.load %arg2[%c1, %c0_7, %c0_8] : memref<3x128x128xbf16, #tpu.memory_space<vmem>>, vector<1x128x128xbf16>
    %13 = vector.shape_cast %12 : vector<1x128x128xbf16> to vector<128x128xbf16>
    %cst_9 = arith.constant dense<0.000000e+00> : vector<16x128xf32>
    %14 = tpu.matmul %11, %13, %cst_9 {dimension_numbers = #tpu.dot_dimension_numbers<[1], [0], [0], [1], [0, 0, 1, 1], [], []>} : vector<16x128xbf16>, vector<128x128xbf16>, vector<16x128xf32> -> vector<16x128xf32>
    %c1_10 = arith.constant 1 : index
    %c0_11 = arith.constant 0 : index
    %15 = vector.load %arg3[%c1_10, %c0_11] : memref<3x128xf32, #tpu.memory_space<vmem>>, vector<1x128xf32>
    %16 = vector.shape_cast %15 : vector<1x128xf32> to vector<128xf32>
    %17 = vector.shape_cast %16 : vector<128xf32> to vector<1x128xf32>
    %18 = vector.broadcast %17 : vector<1x128xf32> to vector<16x128xf32>
    %19 = arith.addf %14, %18 : vector<16x128xf32>
    %20 = arith.truncf %19 : vector<16x128xf32> to vector<16x128xbf16>
    %cst_12 = arith.constant 0.000000e+00 : bf16
    %21 = vector.broadcast %cst_12 : bf16 to vector<16x128xbf16>
    %22 = arith.maximumf %20, %21 : vector<16x128xbf16>
    %c2 = arith.constant 2 : index
    %c0_13 = arith.constant 0 : index
    %c0_14 = arith.constant 0 : index
    %23 = vector.load %arg2[%c2, %c0_13, %c0_14] : memref<3x128x128xbf16, #tpu.memory_space<vmem>>, vector<1x128x128xbf16>
    %24 = vector.shape_cast %23 : vector<1x128x128xbf16> to vector<128x128xbf16>
    %cst_15 = arith.constant dense<0.000000e+00> : vector<16x128xf32>
    %25 = tpu.matmul %22, %24, %cst_15 {dimension_numbers = #tpu.dot_dimension_numbers<[1], [0], [0], [1], [0, 0, 1, 1], [], []>} : vector<16x128xbf16>, vector<128x128xbf16>, vector<16x128xf32> -> vector<16x128xf32>
    %c2_16 = arith.constant 2 : index
    %c0_17 = arith.constant 0 : index
    %26 = vector.load %arg3[%c2_16, %c0_17] : memref<3x128xf32, #tpu.memory_space<vmem>>, vector<1x128xf32>
    %27 = vector.shape_cast %26 : vector<1x128xf32> to vector<128xf32>
    %28 = vector.shape_cast %27 : vector<128xf32> to vector<1x128xf32>
    %29 = vector.broadcast %28 : vector<1x128xf32> to vector<16x128xf32>
    %30 = arith.addf %25, %29 : vector<16x128xf32>
    %31 = arith.truncf %30 : vector<16x128xf32> to vector<16x128xbf16>
    %c0_18 = arith.constant 0 : index
    %c0_19 = arith.constant 0 : index
    %32 = vector.load %arg4[%c0_18, %c0_19] : memref<16x128xbf16, #tpu.memory_space<vmem>>, vector<16x128xbf16>
    tpu.vector_store %arg4[%c0_18, %c0_19], %31 {strides = array<i32>} : memref<16x128xbf16, #tpu.memory_space<vmem>>, vector<16x128xbf16>,
    return
  }
  func.func @transform_0(%arg0: i32) -> (i32, i32) {
    %c0_i32 = arith.constant 0 : i32
    %c0_i32_0 = arith.constant 0 : i32
    return %arg0, %c0_i32 : i32, i32
  }
  func.func @transform_1(%arg0: i32) -> (i32, i32, i32) {
    %c0_i32 = arith.constant 0 : i32
    %c0_i32_0 = arith.constant 0 : i32
    %c0_i32_1 = arith.constant 0 : i32
    %c0_i32_2 = arith.constant 0 : i32
    return %c0_i32, %c0_i32_0, %c0_i32_1 : i32, i32, i32
  }
  func.func @transform_2(%arg0: i32) -> (i32, i32) {
    %c0_i32 = arith.constant 0 : i32
    %c0_i32_0 = arith.constant 0 : i32
    %c0_i32_1 = arith.constant 0 : i32
    return %c0_i32, %c0_i32_0 : i32, i32
  }
  func.func @transform_3(%arg0: i32) -> (i32, i32) {
    %c0_i32 = arith.constant 0 : i32
    %c0_i32_0 = arith.constant 0 : i32
    return %arg0, %c0_i32 : i32, i32
  }
}

</mosaic_0001>

<bundles_post_ra>
// kernel: actor_forward.1
= control target key start
LH: loop header
LB: loop body
LE: loop exit
PB: predicated region body
PF: predicated region fallthrough
CT: control target
= control target key end

     0   :  { %8 = vsyncpa [#allocation3], 0  ;;  %s465_s15 = smov [#allocation2]   ;;  %s466_s17 = smov 64   ;;  %s506_s0 = inlined_call_operand.vmem [shape: bf16[16,128], index: 0, kind: input, shape index: {}]   ;;  %s507_s1 = inlined_call_operand.hbm [shape: bf16[3,128,128], index: 1, kind: input, shape index: {}]   ;;  %s508_s2 = inlined_call_operand.vmem [shape: f32[3,128], index: 2, kind: input, shape index: {}]   ;;  %s509_s3 = inlined_call_operand.vmem [shape: bf16[16,128], index: 3, kind: output, shape index: {}]  }
   0x1   :  { %s15_s14 = sshll.u32 %s507_s1, 4  ;;  %s17_s16 = sshll.u32 %s465_s15, 4  ;;  %s16_s14 = int_to_ptr.hbm [resolvable:$true] %s15_s14  ;;  %s18_s16 = int_to_ptr.vmem [resolvable:$true] %s17_s16 }
   0x2   :  { %s467_s18 = smov 4  }
   0x3   :  { %23 = dma.hbm_to_vmem [thread:$0]  %s16_s14, 3072, %s18_s16, [#allocation3], %s466_s17, %s466_s17, %s467_s18  }
   0x4   :  { %463 = dma.done.wait [#allocation3], 3072  }
   0x5   :  { %464 = vsyncadd [#allocation3], 4294964224  ;;  %v411_v0 = vld [vmem:[#allocation2 + $0x38] sm:$0xff]  ;;  %v410_v1 = vld [vmem:[#allocation2 + $0x30] sm:$0xff] }
   0x6   :  { %104 = vmatpush.bf16.msra.mxu0 %v411_v0  ;;  %v419_v2 = vld [vmem:[#allocation2 + $0x78] sm:$0xff]  ;;  %v418_v3 = vld [vmem:[#allocation2 + $0x70] sm:$0xff]  ;;  %v409_v4 = vld [vmem:[#allocation2 + $0x28] sm:$0xff] }
   0x7   :  { %192 = vmatpush.bf16.msra.mxu1 %v419_v2  ;;  %v417_v5 = vld [vmem:[#allocation2 + $0x68] sm:$0xff]  ;;  %v408_v6 = vld [vmem:[#allocation2 + $0x20] sm:$0xff]  ;;  %v407_v8 = vld [vmem:[#allocation2 + $0x18] sm:$0xff] }
   0x8   :  { %v416_v7 = vld [vmem:[#allocation2 + $0x60] sm:$0xff]  ;;  %v406_v9 = vld [vmem:[#allocation2 + $0x10] sm:$0xff]  ;;  %v405_v10 = vld [vmem:[#allocation2 + $0x8] sm:$0xff] }
   0x9   :  { %v404_v11 = vld [vmem:[#allocation2] sm:$0xff]  ;;  %v415_v13 = vld [vmem:[#allocation2 + $0x58] sm:$0xff]  ;;  %v414_v14 = vld [vmem:[#allocation2 + $0x50] sm:$0xff] }
   0xa   :  { %105 = vmatpush.bf16.msra.mxu0 %v410_v1  ;;  %v403_v12 = vld [vmem:[%s506_s0] sm:$0xff]  ;;  %v413_v15 = vld [vmem:[#allocation2 + $0x48] sm:$0xff]  ;;  %v427_v17 = vld [vmem:[#allocation2 + $0xb8] sm:$0xff] }
   0xb   :  { %193 = vmatpush.bf16.msra.mxu1 %v418_v3  ;;  %v412_v16 = vld [vmem:[#allocation2 + $0x40] sm:$0xff]  ;;  %280 = vmatpush.bf16.msra.mxu2 %v427_v17  ;;  %v426_v18 = vld [vmem:[#allocation2 + $0xb0] sm:$0xff]  ;;  %v425_v19 = vld [vmem:[#allocation2 + $0xa8] sm:$0xff] }
   0xc   :  { %v424_v20 = vld [vmem:[#allocation2 + $0xa0] sm:$0xff]  ;;  %v423_v29 = vld [vmem:[#allocation2 + $0x98] sm:$0xff]  ;;  %v422_v30 = vld [vmem:[#allocation2 + $0x90] sm:$0xff] }
   0xd   :  { %v436_v22 = vld [vmem:[%s508_s2] ss:$0 sm:$0xff]  ;;  %v421_v31 = vld [vmem:[#allocation2 + $0x88] sm:$0xff]  ;;  %v437_v34 = vld [vmem:[%s508_s2 + $0x1] ss:$0 sm:$0xff] }
   0xe   :  { %106 = vmatpush.bf16.msra.mxu0 %v409_v4  ;;  %v420_v32 = vld [vmem:[#allocation2 + $0x80] sm:$0xff] }
   0xf   :  { %194 = vmatpush.bf16.msra.mxu1 %v417_v5  ;;  %281 = vmatpush.bf16.msra.mxu2 %v426_v18  ;;  %v438_v42 = vld [vmem:[%s508_s2 + $0x2] ss:$0 sm:$0xff] }
  0x12   :  { %107 = vmatpush.bf16.msra.mxu0 %v408_v6 }
  0x13   :  { %195 = vmatpush.bf16.msra.mxu1 %v416_v7  ;;  %282 = vmatpush.bf16.msra.mxu2 %v425_v19 }
  0x16   :  { %108 = vmatpush.bf16.msra.mxu0 %v407_v8 }
  0x17   :  { %196 = vmatpush.bf16.msra.mxu1 %v415_v13  ;;  %283 = vmatpush.bf16.msra.mxu2 %v424_v20 }
  0x1a   :  { %109 = vmatpush.bf16.msra.mxu0 %v406_v9 }
  0x1b   :  { %197 = vmatpush.bf16.msra.mxu1 %v414_v14  ;;  %284 = vmatpush.bf16.msra.mxu2 %v423_v29 }
  0x1e   :  { %110 = vmatpush.bf16.msra.mxu0 %v405_v10 }
  0x1f   :  { %198 = vmatpush.bf16.msra.mxu1 %v413_v15  ;;  %285 = vmatpush.bf16.msra.mxu2 %v422_v30 }
  0x22   :  { %111 = vmatpush.bf16.msra.mxu0 %v404_v11 }
  0x23   :  { %199 = vmatpush.bf16.msra.mxu1 %v412_v16  ;;  %286 = vmatpush.bf16.msra.mxu2 %v421_v31 }
  0x25   :  { %112 = vmatmul.bf16.vlgmr.msra.gmra.mxu0 %v403_v12 }
  0x27   :  { %287 = vmatpush.bf16.msra.mxu2 %v420_v32 }
  0xa2   :  { %v113_v21 = vpop.f32.mrf.mxu0 }
  0xa3   :  { %v114_v23 = vadd.f32 %v436_v22, %v113_v21 }
  0xa5   :  { %v122_v26 = vmax.f32 %v114_v23, 0.0 }
  0xaa   :  { %v115_v24 = vpop.f32.mrf.mxu0 }
  0xab   :  { %v116_v25 = vadd.f32 %v436_v22, %v115_v24 }
  0xad   :  { %v123_v27 = vmax.f32 %v116_v25, 0.0 }
  0xaf   :  { %v124_v28 = vpack.c.bf16 %v123_v27, %v122_v26 }
  0xb1   :  { %200 = vmatmul.bf16.vlgmr.msra.gmra.mxu1 %v124_v28 }
 0x12e   :  { %v201_v33 = vpop.f32.mrf.mxu1 }
 0x12f   :  { %v202_v35 = vadd.f32 %v437_v34, %v201_v33 }
 0x131   :  { %v210_v38 = vmax.f32 %v202_v35, 0.0 }
 0x136   :  { %v203_v36 = vpop.f32.mrf.mxu1 }
 0x137   :  { %v204_v37 = vadd.f32 %v437_v34, %v203_v36 }
 0x139   :  { %v211_v39 = vmax.f32 %v204_v37, 0.0 }
 0x13b   :  { %v212_v40 = vpack.c.bf16 %v211_v39, %v210_v38 }
 0x13d   :  { %288 = vmatmul.bf16.vlgmr.msra.gmra.mxu2 %v212_v40 }
 0x1c0   :  { %v289_v41 = vpop.f32.mrf.mxu2 }
 0x1c1   :  { %v290_v44 = vadd.f32 %v438_v42, %v289_v41 }
 0x1c8   :  { %v291_v43 = vpop.f32.mrf.mxu2 }
 0x1c9   :  { %v292_v45 = vadd.f32 %v438_v42, %v291_v43 }
 0x1cb   :  { %v431_v46 = vpack.c.bf16 %v292_v45, %v290_v44 }
 0x1cd   :  { %432 = vst [vmem:[%s509_s3] sm:$0xff] %v431_v46  }
 0x1ce   :  { %302 = vsyncpa [#allocation3], 1 }

</bundles_post_ra>
